<compile_context>
chip_gen: v7x
topology: tpu7x:2x2x1
jax: 0.10.0
libtpu: 0.0.40
codegen_flags: <defaults>
</compile_context>

<pallas_src>
import functools

import numpy as np
import jax
import jax.numpy as jnp
from jax.experimental import pallas as pl
from jax.experimental.pallas import tpu as pltpu

LANE = 128
BN_EPS = 1e-5


def _round_up(x, m):
    return ((x + m - 1) // m) * m


# ----------------------------------------------------------------------------
# Pallas kernels
# ----------------------------------------------------------------------------
def _conv_bn_relu_kernel(x_ref, w_ref, shift_ref, o_ref, *, n_taps, l_out):
    """Fused strided conv + folded-BN + ReLU for one batch element.

    x_ref:     (l_out + n_taps - 1, s*Cin)  space-to-depth'ed padded input (bf16)
    w_ref:     (n_taps, s*Cin, Cout)        BN-scale-folded weights (bf16)
    shift_ref: (1, Cout)                    folded bias/BN shift (f32)
    o_ref:     (l_out, Cout)                output (bf16)
    """
    acc = jnp.dot(x_ref[0:l_out, :], w_ref[0],
                  preferred_element_type=jnp.float32)
    for q in range(1, n_taps):
        acc = acc + jnp.dot(x_ref[q:q + l_out, :], w_ref[q],
                            preferred_element_type=jnp.float32)
    o_ref[...] = jnp.maximum(acc + shift_ref[...], 0.0).astype(o_ref.dtype)


def _head_kernel(yr_ref, yd_ref, w1_ref, w2_ref, b_ref, o_ref):
    """AdaptiveAvgPool1d(1) + Linear + softmax.

    Consumes the raw-branch and (lof|den)-branch activations as separate refs
    so the 768-channel concat is never materialized in HBM.  Classes are
    padded to 128 lanes (pad bias = -1e30 -> softmax mass underflows to 0).
    """
    pr = jnp.mean(yr_ref[...].astype(jnp.float32), axis=1)    # (B, 256)
    pd = jnp.mean(yd_ref[...].astype(jnp.float32), axis=1)    # (B, 512)
    logits = (jnp.dot(pr, w1_ref[...], preferred_element_type=jnp.float32)
              + jnp.dot(pd, w2_ref[...], preferred_element_type=jnp.float32)
              + b_ref[...])
    m = jnp.max(logits, axis=-1, keepdims=True)
    e = jnp.exp(logits - m)
    o_ref[...] = e / jnp.sum(e, axis=-1, keepdims=True)


# ----------------------------------------------------------------------------
# Layer application (wrapper glue: pad + stride->lane reshape only)
# ----------------------------------------------------------------------------
def apply_conv_layer(x, layer):
    """x: (B, L, cin_stored) bf16 -> (B, L_out, cout_stored) bf16."""
    B, L, cin_stored = x.shape
    s = layer["stride"]
    pad_left = layer["pad_left"]
    n_taps = layer["n_taps"]

    # Per-scale output length (PyTorch Conv1d formula) + consistency check
    # (guards against silent shape drift when the scales' L_out would differ).
    louts = [(L + 2 * p - k) // s + 1 for (k, p) in layer["kernel_pads"]]
    l_out = louts[0]
    assert all(lo == l_out for lo in louts), f"scale L_out mismatch: {louts}"

    rows = l_out + n_taps - 1
    pad_right = s * rows - pad_left - L
    assert pad_right >= 0

    xp = jnp.pad(x, ((0, 0), (pad_left, pad_right), (0, 0)))
    xr = xp.reshape(B, rows, s * cin_stored)        # stride folded into lanes

    w, shift = layer["w"], layer["shift"]
    cout = w.shape[-1]
    assert w.shape[1] == s * cin_stored

    kernel = functools.partial(_conv_bn_relu_kernel, n_taps=n_taps, l_out=l_out)
    return pl.pallas_call(
        kernel,
        grid=(B,),
        in_specs=[
            pl.BlockSpec((None, rows, s * cin_stored), lambda b: (b, 0, 0)),
            pl.BlockSpec((n_taps, s * cin_stored, cout), lambda b: (0, 0, 0)),
            pl.BlockSpec((1, cout), lambda b: (0, 0)),
        ],
        out_specs=pl.BlockSpec((None, l_out, cout), lambda b: (b, 0, 0)),
        out_shape=jax.ShapeDtypeStruct((B, l_out, cout), jnp.bfloat16),
        compiler_params=pltpu.CompilerParams(
            dimension_semantics=("parallel",),
            vmem_limit_bytes=32 * 1024 * 1024),
    )(xr, w, shift)


def apply_head(y_raw, y_dual, head):
    B = y_raw.shape[0]
    out = pl.pallas_call(
        _head_kernel,
        out_shape=jax.ShapeDtypeStruct((B, LANE), jnp.float32),
    )(y_raw, y_dual, head["w_raw"], head["w_dual"], head["bias"])
    return out[:, :head["classes"]]


# ----------------------------------------------------------------------------
# Parameter construction (deterministic; shapes match the PyTorch module)
# ----------------------------------------------------------------------------
def _conv_params(key, cout, cin, k):
    """Conv1d weights with eval-mode BatchNorm1d folded in."""
    wkey, bkey = jax.random.split(key)
    w = jax.random.normal(wkey, (cout, cin, k), jnp.float32) / np.sqrt(cin * k)
    b = jax.random.normal(bkey, (cout,), jnp.float32) * 0.01
    gamma = np.ones((cout,), np.float32)
    beta = np.zeros((cout,), np.float32)
    mean = np.zeros((cout,), np.float32)
    var = np.ones((cout,), np.float32)
    scale = gamma / np.sqrt(var + BN_EPS)
    w_eff = np.asarray(w) * scale[:, None, None]      # fold BN scale into W
    shift = beta + scale * (np.asarray(b) - mean)     # fold bias + BN shift
    return w_eff, shift


def _space_to_depth_weight(U, stride):
    """(W, Cin, Cout) tap-major weight -> (Q, stride*Cin, Cout)."""
    w_len, cin, cout = U.shape
    n_taps = -(-w_len // stride)
    Up = np.zeros((n_taps * stride, cin, cout), U.dtype)
    Up[:w_len] = U
    w_sd = Up.reshape(n_taps, stride, cin, cout).reshape(
        n_taps, stride * cin, cout)
    return w_sd, n_taps


def _finish_layer(U, shift, stride, pad_left, kernel_pads):
    w_sd, n_taps = _space_to_depth_weight(U, stride)
    return {
        "w": jnp.asarray(w_sd, jnp.bfloat16),
        "shift": jnp.asarray(shift[None, :], jnp.float32),
        "stride": stride,
        "pad_left": pad_left,
        "n_taps": n_taps,
        "kernel_pads": kernel_pads,
    }


def init_ms_module(key, cin_logical, cin_stored, h, K, C, stride):
    """One MultiscaleModule (h parallel convs, kernels 2^j*K, C/h channels
    each) fused into a single unified conv layer whose output channels are
    already the torch.cat(dim=1) of the scales (zero-padded to 128 lanes)."""
    cj = C // h
    ks = [(2 ** j) * K for j in range(h)]
    pads = [k // 2 for k in ks]
    P = max(pads)
    w_len = max(P - p + k for k, p in zip(ks, pads))
    cout_stored = _round_up(C, LANE)

    U = np.zeros((w_len, cin_stored, cout_stored), np.float32)
    shift = np.zeros((cout_stored,), np.float32)
    for j, (k, p) in enumerate(zip(ks, pads)):
        key, sub = jax.random.split(key)
        w_eff, sh = _conv_params(sub, cj, cin_logical, k)
        t0 = P - p                       # scale j's taps within the window
        U[t0:t0 + k, :cin_logical, j * cj:(j + 1) * cj] = w_eff.transpose(2, 1, 0)
        shift[j * cj:(j + 1) * cj] = sh
    return _finish_layer(U, shift, stride, P, list(zip(ks, pads)))


def init_dual_conv(key, cin_per, cin_stored, cout_per, k, stride):
    """lof + den Conv1DBlocks (same geometry, separate weights) fused into one
    block-diagonal conv layer with output channel order [lof | den | pad]."""
    p = k // 2
    cout_stored = _round_up(2 * cout_per, LANE)
    U = np.zeros((k, cin_stored, cout_stored), np.float32)
    shift = np.zeros((cout_stored,), np.float32)
    for br in range(2):
        key, sub = jax.random.split(key)
        w_eff, sh = _conv_params(sub, cout_per, cin_per, k)
        ci0, co0 = br * cin_per, br * cout_per
        U[:, ci0:ci0 + cin_per, co0:co0 + cout_per] = w_eff.transpose(2, 1, 0)
        shift[co0:co0 + cout_per] = sh
    return _finish_layer(U, shift, stride, p, [(k, p)])


def init_mbscnn(key, classes_num=7):
    k_s = list(range(6, 1, -1))               # [6, 5, 4, 3, 2]
    c_s = [2 ** (i + 4) for i in range(5)]    # [16, 32, 64, 128, 256]
    s_s = [4, 2, 2, 2, 2]
    h = 4

    raw_layers = []
    cin_l, cin_s = 1, 1
    for K, C, S in zip(k_s, c_s, s_s):
        key, sub = jax.random.split(key)
        layer = init_ms_module(sub, cin_l, cin_s, h, K, C, S)
        raw_layers.append(layer)
        cin_l, cin_s = C, layer["w"].shape[-1]

    dual_layers = []
    cin_p, cin_s = 1, 2
    for K, C, S in zip(k_s, c_s, s_s):
        key, sub = jax.random.split(key)
        layer = init_dual_conv(sub, cin_p, cin_s, C, K, S)
        dual_layers.append(layer)
        cin_p, cin_s = C, layer["w"].shape[-1]

    key, kw, kb = jax.random.split(key, 3)
    lw = np.asarray(jax.random.normal(kw, (classes_num, 768), jnp.float32)
                    ) / np.sqrt(768.0)
    lb = np.asarray(jax.random.normal(kb, (classes_num,), jnp.float32)) * 0.01
    w_pad = np.zeros((768, LANE), np.float32)
    w_pad[:, :classes_num] = lw.T
    b_pad = np.full((1, LANE), -1e30, np.float32)   # pad-class logits -> -inf
    b_pad[0, :classes_num] = lb
    head = {
        "w_raw": jnp.asarray(w_pad[:256]),    # channels 0..255   (raw branch)
        "w_dual": jnp.asarray(w_pad[256:]),   # channels 256..767 (lof | den)
        "bias": jnp.asarray(b_pad),
        "classes": classes_num,
    }
    return {"raw": raw_layers, "dual": dual_layers, "head": head}


# ----------------------------------------------------------------------------
# Forward pass
# ----------------------------------------------------------------------------
def mbscnn_forward(params, raw_signal, lof_signal, den_signal):
    # torch unsqueeze(1) == add channel dim; channels-last layout here.
    x_raw = raw_signal[:, :, None].astype(jnp.bfloat16)                 # (B,L,1)
    x_dual = jnp.stack([lof_signal, den_signal], axis=-1).astype(jnp.bfloat16)

    for layer in params["raw"]:        # dropout: identity (eval mode)
        x_raw = apply_conv_layer(x_raw, layer)
    for layer in params["dual"]:
        x_dual = apply_conv_layer(x_dual, layer)

    # x_raw:  (B, L5, 256) == y1 ;  x_dual: (B, L5, 512) == [y2 | y3]
    return apply_head(x_raw, x_dual, params["head"])


if __name__ == "__main__":
    key = jax.random.PRNGKey(0)
    kp, kr, kl, kd = jax.random.split(key, 4)

    B, L = 2, 128   # L chosen so all multiscale conv lengths line up for cat
    raw = jax.random.normal(kr, (B, L), jnp.float32)
    lof = jax.random.normal(kl, (B, L), jnp.float32)
    den = jax.random.normal(kd, (B, L), jnp.float32)

    params = init_mbscnn(kp, classes_num=7)
    out = mbscnn_forward(params, raw, lof, den)
    out = jax.block_until_ready(out)

    assert out.shape == (B, 7), out.shape
    assert bool(jnp.all(jnp.isfinite(out)))
    assert bool(jnp.allclose(jnp.sum(out, axis=-1), 1.0, atol=1e-5))
    print("KERNEL_OK")
</pallas_src>

<mosaic_0001>
module attributes {stable_mosaic.version = 11 : i64} {
  func.func @_conv_bn_relu_kernel(%arg0: i32, %arg1: memref<1x44x4xbf16, #tpu.memory_space<vmem>>, %arg2: memref<12x4x128xbf16, #tpu.memory_space<vmem>>, %arg3: memref<1x128xf32, #tpu.memory_space<vmem>>, %arg4: memref<1x33x128xbf16, #tpu.memory_space<vmem>>) attributes {dimension_semantics = [#tpu.dimension_semantics<parallel>], iteration_bounds = array<i64: 2>, scalar_prefetch = 0 : i64, scratch_operands = 0 : i64, tpu.core_type = #tpu.core_type<tc>, window_params = [{transform_indices = @transform_0, window_bounds = array<i64: 1, 44, 4>}, {pipeline_mode = #tpu.pipeline_mode<synchronous>, transform_indices = @transform_1, window_bounds = array<i64: 12, 4, 128>}, {pipeline_mode = #tpu.pipeline_mode<synchronous>, transform_indices = @transform_2, window_bounds = array<i64: 1, 128>}, {transform_indices = @transform_3, window_bounds = array<i64: 1, 33, 128>}]} {
    %c0 = arith.constant 0 : index
    %c0_0 = arith.constant 0 : index
    %c0_1 = arith.constant 0 : index
    %0 = vector.load %arg1[%c0, %c0_0, %c0_1] : memref<1x44x4xbf16, #tpu.memory_space<vmem>>, vector<1x33x4xbf16>
    %1 = vector.shape_cast %0 : vector<1x33x4xbf16> to vector<33x4xbf16>
    %c0_2 = arith.constant 0 : index
    %c0_3 = arith.constant 0 : index
    %c0_4 = arith.constant 0 : index
    %2 = vector.load %arg2[%c0_2, %c0_3, %c0_4] : memref<12x4x128xbf16, #tpu.memory_space<vmem>>, vector<1x4x128xbf16>
    %3 = vector.shape_cast %2 : vector<1x4x128xbf16> to vector<4x128xbf16>
    %cst = arith.constant dense<0.000000e+00> : vector<33x128xf32>
    %4 = tpu.matmul %1, %3, %cst {dimension_numbers = #tpu.dot_dimension_numbers<[1], [0], [0], [1], [0, 0, 1, 1], [], []>} : vector<33x4xbf16>, vector<4x128xbf16>, vector<33x128xf32> -> vector<33x128xf32>
    %c0_5 = arith.constant 0 : index
    %c1 = arith.constant 1 : index
    %c0_6 = arith.constant 0 : index
    %5 = vector.load %arg1[%c0_5, %c1, %c0_6] : memref<1x44x4xbf16, #tpu.memory_space<vmem>>, vector<1x33x4xbf16>
    %6 = vector.shape_cast %5 : vector<1x33x4xbf16> to vector<33x4xbf16>
    %c1_7 = arith.constant 1 : index
    %c0_8 = arith.constant 0 : index
    %c0_9 = arith.constant 0 : index
    %7 = vector.load %arg2[%c1_7, %c0_8, %c0_9] : memref<12x4x128xbf16, #tpu.memory_space<vmem>>, vector<1x4x128xbf16>
    %8 = vector.shape_cast %7 : vector<1x4x128xbf16> to vector<4x128xbf16>
    %cst_10 = arith.constant dense<0.000000e+00> : vector<33x128xf32>
    %9 = tpu.matmul %6, %8, %cst_10 {dimension_numbers = #tpu.dot_dimension_numbers<[1], [0], [0], [1], [0, 0, 1, 1], [], []>} : vector<33x4xbf16>, vector<4x128xbf16>, vector<33x128xf32> -> vector<33x128xf32>
    %10 = arith.addf %4, %9 : vector<33x128xf32>
    %c0_11 = arith.constant 0 : index
    %c2 = arith.constant 2 : index
    %c0_12 = arith.constant 0 : index
    %11 = vector.load %arg1[%c0_11, %c2, %c0_12] : memref<1x44x4xbf16, #tpu.memory_space<vmem>>, vector<1x33x4xbf16>
    %12 = vector.shape_cast %11 : vector<1x33x4xbf16> to vector<33x4xbf16>
    %c2_13 = arith.constant 2 : index
    %c0_14 = arith.constant 0 : index
    %c0_15 = arith.constant 0 : index
    %13 = vector.load %arg2[%c2_13, %c0_14, %c0_15] : memref<12x4x128xbf16, #tpu.memory_space<vmem>>, vector<1x4x128xbf16>
    %14 = vector.shape_cast %13 : vector<1x4x128xbf16> to vector<4x128xbf16>
    %cst_16 = arith.constant dense<0.000000e+00> : vector<33x128xf32>
    %15 = tpu.matmul %12, %14, %cst_16 {dimension_numbers = #tpu.dot_dimension_numbers<[1], [0], [0], [1], [0, 0, 1, 1], [], []>} : vector<33x4xbf16>, vector<4x128xbf16>, vector<33x128xf32> -> vector<33x128xf32>
    %16 = arith.addf %10, %15 : vector<33x128xf32>
    %c0_17 = arith.constant 0 : index
    %c3 = arith.constant 3 : index
    %c0_18 = arith.constant 0 : index
    %17 = vector.load %arg1[%c0_17, %c3, %c0_18] : memref<1x44x4xbf16, #tpu.memory_space<vmem>>, vector<1x33x4xbf16>
    %18 = vector.shape_cast %17 : vector<1x33x4xbf16> to vector<33x4xbf16>
    %c3_19 = arith.constant 3 : index
    %c0_20 = arith.constant 0 : index
    %c0_21 = arith.constant 0 : index
    %19 = vector.load %arg2[%c3_19, %c0_20, %c0_21] : memref<12x4x128xbf16, #tpu.memory_space<vmem>>, vector<1x4x128xbf16>
    %20 = vector.shape_cast %19 : vector<1x4x128xbf16> to vector<4x128xbf16>
    %cst_22 = arith.constant dense<0.000000e+00> : vector<33x128xf32>
    %21 = tpu.matmul %18, %20, %cst_22 {dimension_numbers = #tpu.dot_dimension_numbers<[1], [0], [0], [1], [0, 0, 1, 1], [], []>} : vector<33x4xbf16>, vector<4x128xbf16>, vector<33x128xf32> -> vector<33x128xf32>
    %22 = arith.addf %16, %21 : vector<33x128xf32>
    %c0_23 = arith.constant 0 : index
    %c4 = arith.constant 4 : index
    %c0_24 = arith.constant 0 : index
    %23 = vector.load %arg1[%c0_23, %c4, %c0_24] : memref<1x44x4xbf16, #tpu.memory_space<vmem>>, vector<1x33x4xbf16>
    %24 = vector.shape_cast %23 : vector<1x33x4xbf16> to vector<33x4xbf16>
    %c4_25 = arith.constant 4 : index
    %c0_26 = arith.constant 0 : index
    %c0_27 = arith.constant 0 : index
    %25 = vector.load %arg2[%c4_25, %c0_26, %c0_27] : memref<12x4x128xbf16, #tpu.memory_space<vmem>>, vector<1x4x128xbf16>
    %26 = vector.shape_cast %25 : vector<1x4x128xbf16> to vector<4x128xbf16>
    %cst_28 = arith.constant dense<0.000000e+00> : vector<33x128xf32>
    %27 = tpu.matmul %24, %26, %cst_28 {dimension_numbers = #tpu.dot_dimension_numbers<[1], [0], [0], [1], [0, 0, 1, 1], [], []>} : vector<33x4xbf16>, vector<4x128xbf16>, vector<33x128xf32> -> vector<33x128xf32>
    %28 = arith.addf %22, %27 : vector<33x128xf32>
    %c0_29 = arith.constant 0 : index
    %c5 = arith.constant 5 : index
    %c0_30 = arith.constant 0 : index
    %29 = vector.load %arg1[%c0_29, %c5, %c0_30] : memref<1x44x4xbf16, #tpu.memory_space<vmem>>, vector<1x33x4xbf16>
    %30 = vector.shape_cast %29 : vector<1x33x4xbf16> to vector<33x4xbf16>
    %c5_31 = arith.constant 5 : index
    %c0_32 = arith.constant 0 : index
    %c0_33 = arith.constant 0 : index
    %31 = vector.load %arg2[%c5_31, %c0_32, %c0_33] : memref<12x4x128xbf16, #tpu.memory_space<vmem>>, vector<1x4x128xbf16>
    %32 = vector.shape_cast %31 : vector<1x4x128xbf16> to vector<4x128xbf16>
    %cst_34 = arith.constant dense<0.000000e+00> : vector<33x128xf32>
    %33 = tpu.matmul %30, %32, %cst_34 {dimension_numbers = #tpu.dot_dimension_numbers<[1], [0], [0], [1], [0, 0, 1, 1], [], []>} : vector<33x4xbf16>, vector<4x128xbf16>, vector<33x128xf32> -> vector<33x128xf32>
    %34 = arith.addf %28, %33 : vector<33x128xf32>
    %c0_35 = arith.constant 0 : index
    %c6 = arith.constant 6 : index
    %c0_36 = arith.constant 0 : index
    %35 = vector.load %arg1[%c0_35, %c6, %c0_36] : memref<1x44x4xbf16, #tpu.memory_space<vmem>>, vector<1x33x4xbf16>
    %36 = vector.shape_cast %35 : vector<1x33x4xbf16> to vector<33x4xbf16>
    %c6_37 = arith.constant 6 : index
    %c0_38 = arith.constant 0 : index
    %c0_39 = arith.constant 0 : index
    %37 = vector.load %arg2[%c6_37, %c0_38, %c0_39] : memref<12x4x128xbf16, #tpu.memory_space<vmem>>, vector<1x4x128xbf16>
    %38 = vector.shape_cast %37 : vector<1x4x128xbf16> to vector<4x128xbf16>
    %cst_40 = arith.constant dense<0.000000e+00> : vector<33x128xf32>
    %39 = tpu.matmul %36, %38, %cst_40 {dimension_numbers = #tpu.dot_dimension_numbers<[1], [0], [0], [1], [0, 0, 1, 1], [], []>} : vector<33x4xbf16>, vector<4x128xbf16>, vector<33x128xf32> -> vector<33x128xf32>
    %40 = arith.addf %34, %39 : vector<33x128xf32>
    %c0_41 = arith.constant 0 : index
    %c7 = arith.constant 7 : index
    %c0_42 = arith.constant 0 : index
    %41 = vector.load %arg1[%c0_41, %c7, %c0_42] : memref<1x44x4xbf16, #tpu.memory_space<vmem>>, vector<1x33x4xbf16>
    %42 = vector.shape_cast %41 : vector<1x33x4xbf16> to vector<33x4xbf16>
    %c7_43 = arith.constant 7 : index
    %c0_44 = arith.constant 0 : index
    %c0_45 = arith.constant 0 : index
    %43 = vector.load %arg2[%c7_43, %c0_44, %c0_45] : memref<12x4x128xbf16, #tpu.memory_space<vmem>>, vector<1x4x128xbf16>
    %44 = vector.shape_cast %43 : vector<1x4x128xbf16> to vector<4x128xbf16>
    %cst_46 = arith.constant dense<0.000000e+00> : vector<33x128xf32>
    %45 = tpu.matmul %42, %44, %cst_46 {dimension_numbers = #tpu.dot_dimension_numbers<[1], [0], [0], [1], [0, 0, 1, 1], [], []>} : vector<33x4xbf16>, vector<4x128xbf16>, vector<33x128xf32> -> vector<33x128xf32>
    %46 = arith.addf %40, %45 : vector<33x128xf32>
    %c0_47 = arith.constant 0 : index
    %c8 = arith.constant 8 : index
    %c0_48 = arith.constant 0 : index
    %47 = vector.load %arg1[%c0_47, %c8, %c0_48] : memref<1x44x4xbf16, #tpu.memory_space<vmem>>, vector<1x33x4xbf16>
    %48 = vector.shape_cast %47 : vector<1x33x4xbf16> to vector<33x4xbf16>
    %c8_49 = arith.constant 8 : index
    %c0_50 = arith.constant 0 : index
    %c0_51 = arith.constant 0 : index
    %49 = vector.load %arg2[%c8_49, %c0_50, %c0_51] : memref<12x4x128xbf16, #tpu.memory_space<vmem>>, vector<1x4x128xbf16>
    %50 = vector.shape_cast %49 : vector<1x4x128xbf16> to vector<4x128xbf16>
    %cst_52 = arith.constant dense<0.000000e+00> : vector<33x128xf32>
    %51 = tpu.matmul %48, %50, %cst_52 {dimension_numbers = #tpu.dot_dimension_numbers<[1], [0], [0], [1], [0, 0, 1, 1], [], []>} : vector<33x4xbf16>, vector<4x128xbf16>, vector<33x128xf32> -> vector<33x128xf32>
    %52 = arith.addf %46, %51 : vector<33x128xf32>
    %c0_53 = arith.constant 0 : index
    %c9 = arith.constant 9 : index
    %c0_54 = arith.constant 0 : index
    %53 = vector.load %arg1[%c0_53, %c9, %c0_54] : memref<1x44x4xbf16, #tpu.memory_space<vmem>>, vector<1x33x4xbf16>
    %54 = vector.shape_cast %53 : vector<1x33x4xbf16> to vector<33x4xbf16>
    %c9_55 = arith.constant 9 : index
    %c0_56 = arith.constant 0 : index
    %c0_57 = arith.constant 0 : index
    %55 = vector.load %arg2[%c9_55, %c0_56, %c0_57] : memref<12x4x128xbf16, #tpu.memory_space<vmem>>, vector<1x4x128xbf16>
    %56 = vector.shape_cast %55 : vector<1x4x128xbf16> to vector<4x128xbf16>
    %cst_58 = arith.constant dense<0.000000e+00> : vector<33x128xf32>
    %57 = tpu.matmul %54, %56, %cst_58 {dimension_numbers = #tpu.dot_dimension_numbers<[1], [0], [0], [1], [0, 0, 1, 1], [], []>} : vector<33x4xbf16>, vector<4x128xbf16>, vector<33x128xf32> -> vector<33x128xf32>
    %58 = arith.addf %52, %57 : vector<33x128xf32>
    %c0_59 = arith.constant 0 : index
    %c10 = arith.constant 10 : index
    %c0_60 = arith.constant 0 : index
    %59 = vector.load %arg1[%c0_59, %c10, %c0_60] : memref<1x44x4xbf16, #tpu.memory_space<vmem>>, vector<1x33x4xbf16>
    %60 = vector.shape_cast %59 : vector<1x33x4xbf16> to vector<33x4xbf16>
    %c10_61 = arith.constant 10 : index
    %c0_62 = arith.constant 0 : index
    %c0_63 = arith.constant 0 : index
    %61 = vector.load %arg2[%c10_61, %c0_62, %c0_63] : memref<12x4x128xbf16, #tpu.memory_space<vmem>>, vector<1x4x128xbf16>
    %62 = vector.shape_cast %61 : vector<1x4x128xbf16> to vector<4x128xbf16>
    %cst_64 = arith.constant dense<0.000000e+00> : vector<33x128xf32>
    %63 = tpu.matmul %60, %62, %cst_64 {dimension_numbers = #tpu.dot_dimension_numbers<[1], [0], [0], [1], [0, 0, 1, 1], [], []>} : vector<33x4xbf16>, vector<4x128xbf16>, vector<33x128xf32> -> vector<33x128xf32>
    %64 = arith.addf %58, %63 : vector<33x128xf32>
    %c0_65 = arith.constant 0 : index
    %c11 = arith.constant 11 : index
    %c0_66 = arith.constant 0 : index
    %65 = vector.load %arg1[%c0_65, %c11, %c0_66] : memref<1x44x4xbf16, #tpu.memory_space<vmem>>, vector<1x33x4xbf16>
    %66 = vector.shape_cast %65 : vector<1x33x4xbf16> to vector<33x4xbf16>
    %c11_67 = arith.constant 11 : index
    %c0_68 = arith.constant 0 : index
    %c0_69 = arith.constant 0 : index
    %67 = vector.load %arg2[%c11_67, %c0_68, %c0_69] : memref<12x4x128xbf16, #tpu.memory_space<vmem>>, vector<1x4x128xbf16>
    %68 = vector.shape_cast %67 : vector<1x4x128xbf16> to vector<4x128xbf16>
    %cst_70 = arith.constant dense<0.000000e+00> : vector<33x128xf32>
    %69 = tpu.matmul %66, %68, %cst_70 {dimension_numbers = #tpu.dot_dimension_numbers<[1], [0], [0], [1], [0, 0, 1, 1], [], []>} : vector<33x4xbf16>, vector<4x128xbf16>, vector<33x128xf32> -> vector<33x128xf32>
    %70 = arith.addf %64, %69 : vector<33x128xf32>
    %c0_71 = arith.constant 0 : index
    %c0_72 = arith.constant 0 : index
    %71 = vector.load %arg3[%c0_71, %c0_72] : memref<1x128xf32, #tpu.memory_space<vmem>>, vector<1x128xf32>
    %72 = vector.broadcast %71 : vector<1x128xf32> to vector<33x128xf32>
    %73 = arith.addf %70, %72 : vector<33x128xf32>
    %cst_73 = arith.constant 0.000000e+00 : f32
    %74 = vector.broadcast %cst_73 : f32 to vector<33x128xf32>
    %75 = arith.maximumf %73, %74 : vector<33x128xf32>
    %76 = arith.truncf %75 : vector<33x128xf32> to vector<33x128xbf16>
    %c0_74 = arith.constant 0 : index
    %c0_75 = arith.constant 0 : index
    %c0_76 = arith.constant 0 : index
    %77 = vector.load %arg4[%c0_74, %c0_75, %c0_76] : memref<1x33x128xbf16, #tpu.memory_space<vmem>>, vector<1x33x128xbf16>
    %78 = vector.shape_cast %77 : vector<1x33x128xbf16> to vector<33x128xbf16>
    %79 = vector.shape_cast %76 : vector<33x128xbf16> to vector<1x33x128xbf16>
    tpu.vector_store %arg4[%c0_74, %c0_75, %c0_76], %79 {strides = array<i32>} : memref<1x33x128xbf16, #tpu.memory_space<vmem>>, vector<1x33x128xbf16>,
    return
  }
  func.func @transform_0(%arg0: i32) -> (i32, i32, i32) {
    %c0_i32 = arith.constant 0 : i32
    %c0_i32_0 = arith.constant 0 : i32
    %c0_i32_1 = arith.constant 0 : i32
    return %arg0, %c0_i32, %c0_i32_0 : i32, i32, i32
  }
  func.func @transform_1(%arg0: i32) -> (i32, i32, i32) {
    %c0_i32 = arith.constant 0 : i32
    %c0_i32_0 = arith.constant 0 : i32
    %c0_i32_1 = arith.constant 0 : i32
    %c0_i32_2 = arith.constant 0 : i32
    return %c0_i32, %c0_i32_0, %c0_i32_1 : i32, i32, i32
  }
  func.func @transform_2(%arg0: i32) -> (i32, i32) {
    %c0_i32 = arith.constant 0 : i32
    %c0_i32_0 = arith.constant 0 : i32
    %c0_i32_1 = arith.constant 0 : i32
    return %c0_i32, %c0_i32_0 : i32, i32
  }
  func.func @transform_3(%arg0: i32) -> (i32, i32, i32) {
    %c0_i32 = arith.constant 0 : i32
    %c0_i32_0 = arith.constant 0 : i32
    %c0_i32_1 = arith.constant 0 : i32
    return %arg0, %c0_i32, %c0_i32_0 : i32, i32, i32
  }
}

</mosaic_0001>

<bundles_post_ra>
// kernel: tpu_custom_call.1
= control target key start
LH: loop header
LB: loop body
LE: loop exit
PB: predicated region body
PF: predicated region fallthrough
CT: control target
= control target key end

     0   :  { %s1747_s12 = smov 0   ;;  %s2118_s0 = inlined_call_operand.vmem [shape: bf16[2,44,4], index: 0, kind: input, shape index: {}]   ;;  %s2119_s1 = inlined_call_operand.vmem [shape: bf16[12,4,128], index: 1, kind: input, shape index: {}]   ;;  %s2120_s2 = inlined_call_operand.vmem [shape: f32[1,128], index: 2, kind: input, shape index: {}]   ;;  %s2121_s3 = inlined_call_operand.vmem [shape: bf16[2,33,128], index: 3, kind: output, shape index: {}]  }
   0x1 LB: > { %s1383_s13 = sadd.s32 4294967295, %s1723_s12   ;;  %p1387_p0 = scmp.ge.s32.totalorder %s1723_s12, 1  ;;  %s1723_s12 = sphi %s1747_s12, %s13_s12  }
   0x2   : > { %p137_p1 = scmp.lt.s32.totalorder %s1723_s12, 3 }
   0x4   : > { %p138_p2 = pnand %p1387_p0, %p137_p1 }
   0x5   : > { %v1390_v0 = vld [vmem:[%s2119_s1 + $0x2] sm:$0x3] (!%p138_p2)  ;;  %vm226_vm0 = vcmask (!%p138_p2), 1041408   ;;  %v177_v1 = vld [vmem:[%s2119_s1] sm:$0x3] (!%p138_p2)  ;;  %v1725_v2 = vmov (!%p138_p2), 0.0  }
   0x6   : > { %141 = sbr.rel (%p138_p2) target bundleno = 387 (0x183), region = 32  ;;  %1523 = vmatprep.subr.bf16.mxu0 (!%p138_p2), %v1725_v2  ;;  %1537 = vmatprep.subr.bf16.mxu1 (!%p138_p2), %v1725_v2  ;;  %v228_v3 = vsel (!%p138_p2), %vm226_vm0, %v1390_v0, 0  ;;  %v293_v4 = vsel (!%p138_p2), %vm226_vm0, %v177_v1, 0  ;;  %p161_p3 = scmp.lt.s32.totalorder (!%p138_p2), %s1383_s13, 1  ;;  %vm1726_vm1 = vmmov (!%p138_p2), 0   ;;  %vm216_vm2 = vcmask (!%p138_p2), 31744  }
   0x7   : > { %1524 = vmatpush3.bf16.msra.mxu0 (!%p138_p2), %v228_v3  ;;  %1538 = vmatpush3.bf16.msra.mxu1 (!%p138_p2), %v293_v4  ;;  %v1406_v5 = vld [vmem:[%s2119_s1 + $0x6] sm:$0x3] (!%p138_p2)  ;;  %v1400_v20 = vld [vmem:[%s2119_s1 + $0x4] sm:$0x3] (!%p138_p2)  ;;  %vm193_vm3 = vsmask.f32 (!%p138_p2), 7424 }
   0x8   : > { %1539 = vmatprep.mubr.msk.bf16.mxu1 (!%p138_p2), %vm1726_vm1, %v1725_v2  ;;  %1525 = vmatprep.mubr.msk.bf16.mxu0 (!%p138_p2), %vm1726_vm1, %v1725_v2  ;;  %v474_v8 = vsel (!%p138_p2), %vm226_vm0, %v1406_v5, 0  ;;  %v377_v25 = vsel (!%p138_p2), %vm226_vm0, %v1400_v20, 0  ;;  %v1416_v29 = vld [vmem:[%s2119_s1 + $0xa] sm:$0x3] (!%p138_p2)  ;;  %vm442_vm4 = vsmask.f32 (!%p138_p2), 6400 }
   0x9   : > { %1551 = vmatprep.subr.bf16.mxu0 (!%p138_p2), %v1725_v2  ;;  %1565 = vmatprep.subr.bf16.mxu1 (!%p138_p2), %v1725_v2  ;;  %v1835_v33 = vsel (!%p138_p2), %vm226_vm0, %v1416_v29, 0  ;;  %vm814_vm5 = vsmask.f32 (!%p138_p2), 4352  ;;  %vm733_vm6 = vcmask (!%p138_p2), 1044480   ;;  %vm361_vm7 = vcmask (!%p138_p2), 1046528  }
   0xa   : > { %vm628_vm8 = vsmask.f32 (!%p138_p2), 5376  ;;  %vm547_vm9 = vcmask (!%p138_p2), 1045504   ;;  %vm1322_vm10 = vcmask (!%p138_p2), 1040384   ;;  %vm1323_vm11 = vsmask.f32 (!%p138_p2), 256 }
   0xb   : > { %vm1324_vm12 = vmand (!%p138_p2), %vm1322_vm10, %vm1323_vm11 }
   0xd   : > { %s2123_s13 = smov (!%p161_p3, %s1383_s13), 1 }
   0xe   : > { %s1691_s18 = smul.u32 24, %s2123_s13 }
   0xf   : > { %s1692_s19 = smul.u32 20, %s2123_s13 }
  0x10   : > { %s1780_s23 = scalar_lea.vmem %s2118_s0, %s1691_s18 }
  0x11   : > { %v172_v6 = vld [vmem:[%s1780_s23] sm:$0xf]  ;;  %v1784_v7 = vld [vmem:[%s1780_s23 + $0x4] sm:$0xf]  ;;  %v1794_v13 = vld [vmem:[%s1780_s23 + $0x8] sm:$0xff]   ;;  %s2109_s22 = scalar_lea.vmem %s2121_s3, %s1692_s19 }
  0x12   : > { %v1391_v9 = vcombine.low %v172_v6, %v1784_v7  ;;  %v351_v10 = vld [vmem:[%s1780_s23] sm:$0xe]  ;;  %v1798_v16 = vld [vmem:[%s1780_s23 + $0x10] ss:$0 sps:$4 sm:$0x11]   ;;  %v1801_v17 = vshll.u32 %v1794_v13, 16 }
  0x13   : > { %v723_v11 = vld [vmem:[%s1780_s23] sm:$0x8]  ;;  %v1806_v18 = vcombine.low %v351_v10, %v1784_v7  ;;  %v1814_v23 = vshrl.u32 %v1794_v13, 16  ;;  %v210_v24 = vshll.u32 %v1798_v16, 16  ;;  %v214_v37 = vshrl.u32 %v1798_v16, 16  ;;  %v1857_v54 = vld [vmem:[%s1780_s23 + $0xc] sm:$0xff]  }
  0x14   : > { %v1791_v12 = vcombine.low %v723_v11, %v1784_v7  ;;  %1540 = vmatmul.mubr.msk.bf16.vlgmr.msra.gmra.mrb[0].mxu1 %vm216_vm2, %v1391_v9  ;;  %v195_v14 = vshrl.u32 %v1391_v9, 16  ;;  %v197_v15 = vshll.u32 %v1391_v9, 16  ;;  %v204_v21 = vrot.slane %v1801_v17, 1  ;;  %v1829_v32 = vld [vmem:[%s1780_s23 + $0x10] ss:$0 sps:$4 sm:$0x33]  }
  0x15   : > { %1566 = vmatpush3.bf16.msra.mxu1 %v474_v8  ;;  %1543 = vmatprep.mubr.msk.bf16.mxu1 %vm1726_vm1, %v1725_v2  ;;  %v444_v27 = vshrl.u32 %v1806_v18, 16  ;;  %v447_v28 = vshll.u32 %v1806_v18, 16  ;;  %v212_v31 = vrot.slane %v210_v24, 1  ;;  %v362_v36 = vrot.slane %v1806_v18, 1  ;;  %v1845_v41 = vld [vmem:[%s1780_s23 + $0x10] ss:$0 sps:$4 sm:$0xff]  }
  0x16   : > { %v199_v19 = vrot.slane %v197_v15, 1  ;;  %1593 = vmatprep.subr.bf16.mxu1 %v1725_v2  ;;  %v208_v30 = vor.u32 %v1814_v23, %v204_v21  ;;  %v451_v38 = vrot.slane %v1814_v23, 1  ;;  %v452_v39 = vrot.slane %v1801_v17, 2  ;;  %v909_v48 = vld [vmem:[%s1780_s23 + $0x4] sm:$0xf] }
  0x17   : > { %v446_v34 = vrot.slane %v444_v27, 1  ;;  %v449_v35 = vrot.slane %v447_v28, 2  ;;  %v816_v40 = vshrl.u32 %v1791_v12, 16  ;;  %v363_v43 = vrot.slane %v1794_v13, 1  ;;  %v910_v53 = vld [vmem:[%s1780_s23 + $0x8] sm:$0xf] }
  0x18   : > { %v200_v22 = vor.u32 %v199_v19, %v195_v14  ;;  %v213_v42 = vsel %vm193_vm3, %v208_v30, %v212_v31  ;;  %v456_v44 = vshrl.u32 %v1829_v32, 16  ;;  %v819_v45 = vshll.u32 %v1791_v12, 16  ;;  %v1870_v63 = vld [vmem:[%s1780_s23 + $0x14] ss:$0 sps:$4 sm:$0x11]  }
  0x19   : > { %v818_v46 = vrot.slane %v816_v40, 3  ;;  %v823_v47 = vrot.slane %v1814_v23, 3  ;;  %v450_v49 = vor.u32 %v449_v35, %v446_v34  ;;  %v824_v51 = vrot.slane %v1801_v17, 4  ;;  %v1096_v10 = vld [vmem:[%s1780_s23 + $0x4] sm:$0xe] }
  0x1a   : > { %v205_v26 = vsel %vm193_vm3, %v200_v22, %v204_v21  ;;  %v821_v50 = vrot.slane %v819_v45, 4  ;;  %v734_v52 = vrot.slane %v1791_v12, 3  ;;  %v459_v55 = vshll.u32 %v1829_v32, 16  ;;  %v1903_v22 = vld [vmem:[%s1780_s23 + $0x14] ss:$0 sps:$4 sm:$0x33]  }
  0x1b   : > { %1526 = vmatmul.mubr.msk.bf16.vlgmr.msra.gmra.mrb[0].mxu0 %vm216_vm2, %v205_v26  ;;  %v735_v56 = vrot.slane %v1794_v13, 3  ;;  %v828_v57 = vshrl.u32 %v1845_v41, 16  ;;  %v831_v58 = vshll.u32 %v1845_v41, 16  ;;  %v1866_v59 = vor.u32 %v452_v39, %v451_v38 }
  0x1c   : > { %1552 = vmatpush3.bf16.msra.mxu0 %v377_v25  ;;  %1529 = vmatprep.mubr.msk.bf16.mxu0 %vm1726_vm1, %v1725_v2  ;;  %v822_v60 = vor.u32 %v821_v50, %v818_v46  ;;  %v825_v61 = vor.u32 %v824_v51, %v823_v47  ;;  %v737_v62 = vrot.slane %v1845_v41, 3  ;;  %v1879_v4 = vcombine.low %v909_v48, %v910_v53 }
  0x1d   : > { %1544 = vmatmul.mubr.msk.bf16.gmra.mrb[4].mxu1 %vm216_vm2, %v1794_v13  ;;  %1579 = vmatprep.subr.bf16.mxu0 %v1725_v2  ;;  %v1875_v0 = vsel %vm733_vm6, %v734_v52, %v735_v56  ;;  %v1877_v1 = vrot.slane %v828_v57, 3  ;;  %v833_v3 = vrot.slane %v831_v58, 4  ;;  %v1883_v5 = vrot.slane %v456_v44, 1 }
  0x1e   : > { %1547 = vmatprep.mubr.msk.bf16.mxu1 %vm1726_vm1, %v1725_v2  ;;  %v1886_v6 = vsel %vm814_vm5, %v822_v60, %v825_v61  ;;  %v1891_v8 = vsel %vm733_vm6, %v735_v56, %v737_v62  ;;  %v1010_v9 = vshll.u32 %v1857_v54, 16  ;;  %v461_v11 = vrot.slane %v459_v55, 2  ;;  %v537_v55 = vld [vmem:[%s1780_s23] sm:$0xc] }
  0x1f   : > { %v834_v12 = vor.u32 %v833_v3, %v1877_v1  ;;  %v1004_v14 = vshrl.u32 %v1879_v4, 16  ;;  %v1006_v15 = vshll.u32 %v1879_v4, 16  ;;  %v1014_v20 = vshrl.u32 %v1857_v54, 16 }
  0x20   : > { %v1012_v19 = vrot.slane %v1010_v9, 1  ;;  %v1017_v21 = vshll.u32 %v1870_v63, 16  ;;  %v1442_v26 = vcombine.low %v1096_v10, %v910_v53  ;;  %v1195_v27 = vrot.slane %v1010_v9, 2 }
  0x21   : > { %v1906_v24 = vsel %vm814_vm5, %v825_v61, %v834_v12  ;;  %v1008_v25 = vrot.slane %v1006_v15, 1  ;;  %v1194_v30 = vrot.slane %v1014_v20, 1  ;;  %v1107_v31 = vrot.slane %v1857_v54, 1 }
  0x22   : > { %v1016_v28 = vor.u32 %v1014_v20, %v1012_v19  ;;  %v1019_v29 = vrot.slane %v1017_v21, 1  ;;  %v1187_v35 = vshrl.u32 %v1442_v26, 16  ;;  %v1190_v38 = vshll.u32 %v1442_v26, 16 }
  0x23   : > { %1530 = vmatmul.mubr.msk.bf16.gmra.mrb[4].mxu0 %vm216_vm2, %v213_v42  ;;  %v1009_v34 = vor.u32 %v1008_v25, %v1004_v14  ;;  %v1106_v39 = vrot.slane %v1442_v26, 1  ;;  %v1196_v42 = vor.u32 %v1195_v27, %v1194_v30  ;;  %v1199_v44 = vshrl.u32 %v1903_v22, 16 }
  0x24   : > { %1533 = vmatprep.mubr.msk.bf16.mxu0 %vm1726_vm1, %v1725_v2  ;;  %v1913_v40 = vsel %vm193_vm3, %v1016_v28, %v1019_v29  ;;  %v1202_v45 = vshll.u32 %v1903_v22, 16  ;;  %v1189_v46 = vrot.slane %v1187_v35, 1  ;;  %v1192_v47 = vrot.slane %v1190_v38, 2  ;;  %v1420_v28 = vld [vmem:[%s2119_s1 + $0xc] sm:$0x3] }
  0x25   : > { %1548 = vmatmul.mubr.msk.bf16.gmra.mrb[8].mxu1 %vm216_vm2, %v1798_v16  ;;  %v454_v16 = vsel %vm442_vm4, %v450_v49, %v1866_v59  ;;  %v1922_v48 = vsel %vm361_vm7, %v1106_v39, %v1107_v31  ;;  %v1410_v49 = vld [vmem:[%s2119_s1 + $0x8] sm:$0x3]  ;;  %v462_v50 = vor.u32 %v461_v11, %v1883_v5  ;;  %v1931_v51 = vrot.slane %v1199_v44, 1  ;;  %v1710_v11 = vld [vmem:[%s1780_s23 + $0x10] ss:$0 sps:$4 sm:$0x77]  }
  0x26   : > { %1567 = vmatprep.mubr.msk.bf16.mxu1 %vm1726_vm1, %v1725_v2  ;;  %v1204_v52 = vrot.slane %v1202_v45, 2  ;;  %v1109_v53 = vrot.slane %v1903_v22, 1  ;;  %v1193_v56 = vor.u32 %v1192_v47, %v1189_v46  ;;  %v563_v60 = vsel %vm226_vm0, %v1410_v49, 0  ;;  %v1437_v38 = vld [vmem:[%s2119_s1 + $0x12] sm:$0x3] }
  0x27   : > { %v1411_v3 = vcombine.low %v537_v55, %v1784_v7  ;;  %v463_v18 = vsel %vm442_vm4, %v1866_v59, %v462_v50  ;;  %v365_v9 = vrot.slane %v1829_v32, 1  ;;  %v637_v15 = vrot.slane %v1814_v23, 2 }
  0x28   : > { %v1205_v57 = vor.u32 %v1204_v52, %v1931_v51  ;;  %v1945_v58 = vsel %vm361_vm7, %v1107_v31, %v1109_v53  ;;  %v1949_v61 = vsel %vm442_vm4, %v1193_v56, %v1196_v42  ;;  %v638_v32 = vrot.slane %v1801_v17, 3  ;;  %v1426_v17 = vld [vmem:[%s2119_s1 + $0xe] sm:$0x3] }
  0x29   : > { %v630_v7 = vshrl.u32 %v1411_v3, 16  ;;  %v633_v59 = vshll.u32 %v1411_v3, 16  ;;  %v366_v10 = vsel %vm361_vm7, %v363_v43, %v365_v9  ;;  %v645_v20 = vshll.u32 %v1710_v11, 16 }
  0x2a   : > { %v548_v26 = vrot.slane %v1411_v3, 2  ;;  %v549_v27 = vrot.slane %v1794_v13, 2  ;;  %v749_v31 = vsel %vm226_vm0, %v1420_v28, 0  ;;  %v1033_v39 = vsel %vm226_vm0, %v1437_v38, 0 }
  0x2b   : > { %1534 = vmatmul.mubr.msk.bf16.gmra.mrb[8].mxu0 %vm216_vm2, %v214_v37  ;;  %v1919_v37 = vsel %vm193_vm3, %v1009_v34, %v1012_v19  ;;  %v632_v12 = vrot.slane %v630_v7, 2  ;;  %v635_v14 = vrot.slane %v633_v59, 3  ;;  %v642_v19 = vshrl.u32 %v1710_v11, 16 }
  0x2c   : > { %1553 = vmatprep.mubr.msk.bf16.mxu0 %vm1726_vm1, %v1725_v2  ;;  %v647_v25 = vrot.slane %v645_v20, 3  ;;  %v550_v30 = vsel %vm547_vm9, %v548_v26, %v549_v27  ;;  %v551_v34 = vrot.slane %v1710_v11, 2 }
  0x2d   : > { %1568 = vmatmul.mubr.msk.bf16.vlgmr.msra.gmra.mrb[12].mxu1 %vm216_vm2, %v454_v16  ;;  %v636_v16 = vor.u32 %v635_v14, %v632_v12  ;;  %v644_v21 = vrot.slane %v642_v19, 2 }
  0x2e   : > { %1594 = vmatpush3.bf16.msra.mxu1 %v1835_v33  ;;  %1571 = vmatprep.mubr.msk.bf16.mxu1 %vm1726_vm1, %v1725_v2  ;;  %v364_v33 = vsel %vm361_vm7, %v362_v36, %v363_v43  ;;  %v1955_v36 = vsel %vm442_vm4, %v1196_v42, %v1205_v57  ;;  %v639_v43 = vor.u32 %v638_v32, %v637_v15  ;;  %v1430_v42 = vld [vmem:[%s2119_s1 + $0x10] sm:$0x3] }
  0x2f   : > { %1621 = vmatprep.subr.bf16.mxu1 %v1725_v2  ;;  %v648_v29 = vor.u32 %v647_v25, %v644_v21  ;;  %v552_v35 = vsel %vm547_vm9, %v549_v27, %v551_v34  ;;  %v939_v44 = vsel %vm226_vm0, %v1430_v42, 0 }
  0x30   : > { %v640_v23 = vsel %vm628_vm8, %v636_v16, %v639_v43 }
  0x31   : > { %v649_v13 = vsel %vm628_vm8, %v639_v43, %v648_v29 }
  0x33   : > { %1554 = vmatmul.mubr.msk.bf16.vlgmr.msra.gmra.mrb[12].mxu0 %vm216_vm2, %v364_v33 }
  0x34   : > { %1580 = vmatpush3.bf16.msra.mxu0 %v563_v60  ;;  %1557 = vmatprep.mubr.msk.bf16.mxu0 %vm1726_vm1, %v1725_v2 }
  0x35   : > { %1572 = vmatmul.mubr.msk.bf16.gmra.mrb[16].mxu1 %vm216_vm2, %v463_v18  ;;  %1607 = vmatprep.subr.bf16.mxu0 %v1725_v2 }
  0x36   : > { %1575 = vmatprep.mubr.msk.bf16.mxu1 %vm1726_vm1, %v1725_v2 }
  0x3b   : > { %1558 = vmatmul.mubr.msk.bf16.gmra.mrb[16].mxu0 %vm216_vm2, %v366_v10 }
  0x3c   : > { %1561 = vmatprep.mubr.msk.bf16.mxu0 %vm1726_vm1, %v1725_v2 }
  0x3d   : > { %1576 = vmatmul.mubr.msk.bf16.gmra.mrb[20].mxu1 %vm216_vm2, %v1883_v5  ;;  %v846_v5 = vsel %vm226_vm0, %v1426_v17, 0 }
  0x3e   : > { %1595 = vmatprep.mubr.msk.bf16.mxu1 %vm1726_vm1, %v1725_v2 }
  0x43   : > { %1562 = vmatmul.mubr.msk.bf16.gmra.mrb[20].mxu0 %vm216_vm2, %v365_v9 }
  0x44   : > { %1581 = vmatprep.mubr.msk.bf16.mxu0 %vm1726_vm1, %v1725_v2 }
  0x45   : > { %1596 = vmatmul.mubr.msk.bf16.vlgmr.msra.gmra.mrb[24].mxu1 %vm216_vm2, %v640_v23 }
  0x46   : > { %1622 = vmatpush3.bf16.msra.mxu1 %v846_v5  ;;  %1599 = vmatprep.mubr.msk.bf16.mxu1 %vm1726_vm1, %v1725_v2 }
  0x47   : > { %1649 = vmatprep.subr.bf16.mxu1 %v1725_v2 }
  0x4b   : > { %1582 = vmatmul.mubr.msk.bf16.vlgmr.msra.gmra.mrb[24].mxu0 %vm216_vm2, %v550_v30 }
  0x4c   : > { %1608 = vmatpush3.bf16.msra.mxu0 %v749_v31  ;;  %1585 = vmatprep.mubr.msk.bf16.mxu0 %vm1726_vm1, %v1725_v2 }
  0x4d   : > { %1600 = vmatmul.mubr.msk.bf16.gmra.mrb[28].mxu1 %vm216_vm2, %v649_v13  ;;  %1635 = vmatprep.subr.bf16.mxu0 %v1725_v2 }
  0x4e   : > { %1603 = vmatprep.mubr.msk.bf16.mxu1 %vm1726_vm1, %v1725_v2 }
  0x53   : > { %1586 = vmatmul.mubr.msk.bf16.gmra.mrb[28].mxu0 %vm216_vm2, %v552_v35 }
  0x54   : > { %1589 = vmatprep.mubr.msk.bf16.mxu0 %vm1726_vm1, %v1725_v2 }
  0x55   : > { %1604 = vmatmul.mubr.msk.bf16.gmra.mrb[32].mxu1 %vm216_vm2, %v644_v21 }
  0x56   : > { %1623 = vmatprep.mubr.msk.bf16.mxu1 %vm1726_vm1, %v1725_v2 }
  0x5b   : > { %1590 = vmatmul.mubr.msk.bf16.gmra.mrb[32].mxu0 %vm216_vm2, %v551_v34 }
  0x5c   : > { %1609 = vmatprep.mubr.msk.bf16.mxu0 %vm1726_vm1, %v1725_v2 }
  0x5d   : > { %1624 = vmatmul.mubr.msk.bf16.vlgmr.msra.gmra.mrb[36].mxu1 %vm216_vm2, %v1886_v6 }
  0x5e   : > { %1650 = vmatpush3.bf16.msra.mxu1 %v1033_v39  ;;  %1627 = vmatprep.mubr.msk.bf16.mxu1 %vm1726_vm1, %v1725_v2 }
  0x5f   : > { %1677 = vmatprep.subr.bf16.mxu1 %v1725_v2 }
  0x63   : > { %1610 = vmatmul.mubr.msk.bf16.vlgmr.msra.gmra.mrb[36].mxu0 %vm216_vm2, %v1875_v0  ;;  %v1447_v0 = vld [vmem:[%s2119_s1 + $0x16] sm:$0x3] }
  0x64   : > { %1636 = vmatpush3.bf16.msra.mxu0 %v939_v44  ;;  %1613 = vmatprep.mubr.msk.bf16.mxu0 %vm1726_vm1, %v1725_v2  ;;  %v1217_v6 = vsel %vm226_vm0, %v1447_v0, 0 }
  0x65   : > { %1628 = vmatmul.mubr.msk.bf16.gmra.mrb[40].mxu1 %vm216_vm2, %v1906_v24  ;;  %1663 = vmatprep.subr.bf16.mxu0 %v1725_v2 }
  0x66   : > { %1631 = vmatprep.mubr.msk.bf16.mxu1 %vm1726_vm1, %v1725_v2 }
  0x6b   : > { %1614 = vmatmul.mubr.msk.bf16.gmra.mrb[40].mxu0 %vm216_vm2, %v1891_v8 }
  0x6c   : > { %1617 = vmatprep.mubr.msk.bf16.mxu0 %vm1726_vm1, %v1725_v2 }
  0x6d   : > { %1632 = vmatmul.mubr.msk.bf16.gmra.mrb[44].mxu1 %vm216_vm2, %v1877_v1  ;;  %v1441_v1 = vld [vmem:[%s2119_s1 + $0x14] sm:$0x3] }
  0x6e   : > { %1651 = vmatprep.mubr.msk.bf16.mxu1 %vm1726_vm1, %v1725_v2  ;;  %v1121_v41 = vsel %vm226_vm0, %v1441_v1, 0 }
  0x73   : > { %1618 = vmatmul.mubr.msk.bf16.gmra.mrb[44].mxu0 %vm216_vm2, %v737_v62  ;;  %v1021_v62 = vshrl.u32 %v1870_v63, 16 }
  0x74   : > { %1637 = vmatprep.mubr.msk.bf16.mxu0 %vm1726_vm1, %v1725_v2 }
  0x75   : > { %1652 = vmatmul.mubr.msk.bf16.vlgmr.msra.gmra.mrb[48].mxu1 %vm216_vm2, %v1919_v37 }
  0x76   : > { %1678 = vmatpush3.bf16.msra.mxu1 %v1217_v6  ;;  %1655 = vmatprep.mubr.msk.bf16.mxu1 %vm1726_vm1, %v1725_v2 }
  0x7b   : > { %1638 = vmatmul.mubr.msk.bf16.vlgmr.msra.gmra.mrb[48].mxu0 %vm216_vm2, %v1879_v4 }
  0x7c   : > { %1664 = vmatpush3.bf16.msra.mxu0 %v1121_v41  ;;  %1641 = vmatprep.mubr.msk.bf16.mxu0 %vm1726_vm1, %v1725_v2 }
  0x7d   : > { %1656 = vmatmul.mubr.msk.bf16.gmra.mrb[52].mxu1 %vm216_vm2, %v1913_v40 }
  0x7e   : > { %1659 = vmatprep.mubr.msk.bf16.mxu1 %vm1726_vm1, %v1725_v2 }
  0x83   : > { %1642 = vmatmul.mubr.msk.bf16.gmra.mrb[52].mxu0 %vm216_vm2, %v1857_v54 }
  0x84   : > { %1645 = vmatprep.mubr.msk.bf16.mxu0 %vm1726_vm1, %v1725_v2 }
  0x85   : > { %1660 = vmatmul.mubr.msk.bf16.gmra.mrb[56].mxu1 %vm216_vm2, %v1021_v62 }
  0x86   : > { %1679 = vmatprep.mubr.msk.bf16.mxu1 %vm1726_vm1, %v1725_v2 }
  0x8b   : > { %1646 = vmatmul.mubr.msk.bf16.gmra.mrb[56].mxu0 %vm216_vm2, %v1870_v63 }
  0x8c   : > { %1665 = vmatprep.mubr.msk.bf16.mxu0 %vm1726_vm1, %v1725_v2 }
  0x8d   : > { %1680 = vmatmul.mubr.msk.bf16.vlgmr.msra.gmra.mrb[60].mxu1 %vm216_vm2, %v1949_v61 }
  0x8e   : > { %1683 = vmatprep.mubr.msk.bf16.mxu1 %vm1726_vm1, %v1725_v2 }
  0x93   : > { %1666 = vmatmul.mubr.msk.bf16.vlgmr.msra.gmra.mrb[60].mxu0 %vm216_vm2, %v1922_v48 }
  0x94   : > { %1669 = vmatprep.mubr.msk.bf16.mxu0 %vm1726_vm1, %v1725_v2 }
  0x95   : > { %1684 = vmatmul.mubr.msk.bf16.gmra.mrb[64].mxu1 %vm216_vm2, %v1955_v36 }
  0x96   : > { %1687 = vmatprep.mubr.msk.bf16.mxu1 %vm1726_vm1, %v1725_v2 }
  0x9b   : > { %1670 = vmatmul.mubr.msk.bf16.gmra.mrb[64].mxu0 %vm216_vm2, %v1945_v58 }
  0x9c   : > { %1673 = vmatprep.mubr.msk.bf16.mxu0 %vm1726_vm1, %v1725_v2 }
  0x9d   : > { %1688 = vmatmul.mubr.msk.bf16.gmra.mrb[68].mxu1 %vm216_vm2, %v1931_v51 }
  0xa3   : > { %1674 = vmatmul.mubr.msk.bf16.gmra.mrb[68].mxu0 %vm216_vm2, %v1109_v53 }
  0xe7   : > { %v329_v54 = vpop.f32.mrb[0].mxu1 }
  0xe8   : > { %v1541_v63 = vpop.f32.mrb[1].mxu1 }
  0xe9   : > { %v332_v4 = vpop.f32.mrb[2].mxu1 }
  0xea   : > { %v1542_v8 = vpop.f32.mrb[3].mxu1 }
  0xee   : > { %v264_v24 = vpop.f32.mrb[0].mxu0 }
  0xef   : > { %v330_v40 = vadd.f32 %v329_v54, %v264_v24  ;;  %v1527_v45 = vpop.f32.mrb[1].mxu0 }
  0xf0   : > { %v267_v37 = vpop.f32.mrb[2].mxu0  ;;  %v337_v46 = vpop.f32.mrb[4].mxu1 }
  0xf1   : > { %v333_v47 = vadd.f32 %v332_v4, %v267_v37  ;;  %v1528_v48 = vpop.f32.mrb[3].mxu0  ;;  %v1545_v49 = vpop.f32.mrb[5].mxu1 }
  0xf2   : > { %v340_v2 = vpop.f32.mrb[6].mxu1 }
  0xf3   : > { %v1546_v50 = vpop.f32.mrb[7].mxu1 }
  0xf6   : > { %v272_v52 = vpop.f32.mrb[4].mxu0 }
  0xf7   : > { %v338_v51 = vadd.f32 %v337_v46, %v272_v52  ;;  %v1531_v55 = vpop.f32.mrb[5].mxu0 }
  0xf8   : > { %v275_v22 = vpop.f32.mrb[6].mxu0  ;;  %v345_v56 = vpop.f32.mrb[8].mxu1 }
  0xf9   : > { %v341_v53 = vadd.f32 %v340_v2, %v275_v22  ;;  %v1532_v33 = vpop.f32.mrb[7].mxu0  ;;  %v1549_v57 = vpop.f32.mrb[9].mxu1 }
  0xfa   : > { %v348_v58 = vpop.f32.mrb[10].mxu1 }
  0xfb   : > { %v1550_v60 = vpop.f32.mrb[11].mxu1 }
  0xfe   : > { %v280_v61 = vpop.f32.mrb[8].mxu0 }
  0xff   : > { %v346_v3 = vadd.f32 %v345_v56, %v280_v61  ;;  %v1535_v18 = vpop.f32.mrb[9].mxu0 }
 0x100   : > { %v283_v36 = vpop.f32.mrb[10].mxu0  ;;  %v510_v9 = vpop.f32.mrb[12].mxu1 }
 0x101   : > { %v1536_v7 = vpop.f32.mrb[11].mxu0  ;;  %v1569_v59 = vpop.f32.mrb[13].mxu1 }
 0x102   : > { %v513_v10 = vpop.f32.mrb[14].mxu1 }
 0x103   : > { %v1570_v11 = vpop.f32.mrb[15].mxu1 }
 0x106   : > { %v413_v12 = vpop.f32.mrb[12].mxu0 }
 0x107   : > { %v435_v14 = vadd.f32 %v413_v12, %v330_v40  ;;  %v1555_v15 = vpop.f32.mrb[13].mxu0 }
 0x108   : > { %v416_v32 = vpop.f32.mrb[14].mxu0  ;;  %v518_v16 = vpop.f32.mrb[16].mxu1 }
 0x109   : > { %v436_v43 = vadd.f32 %v416_v32, %v333_v47  ;;  %v1556_v19 = vpop.f32.mrb[15].mxu0  ;;  %v1573_v20 = vpop.f32.mrb[17].mxu1  ;;  %v532_v17 = vadd.f32 %v510_v9, %v435_v14 }
 0x10a   : > { %v521_v23 = vpop.f32.mrb[18].mxu1 }
 0x10b   : > { %v1574_v21 = vpop.f32.mrb[19].mxu1  ;;  %v533_v25 = vadd.f32 %v513_v10, %v436_v43 }
 0x10e   : > { %v421_v5 = vpop.f32.mrb[16].mxu0 }
 0x10f   : > { %v437_v26 = vadd.f32 %v421_v5, %v338_v51  ;;  %v1559_v27 = vpop.f32.mrb[17].mxu0 }
 0x110   : > { %v424_v28 = vpop.f32.mrb[18].mxu0  ;;  %v526_v29 = vpop.f32.mrb[20].mxu1 }
 0x111   : > { %v438_v30 = vadd.f32 %v424_v28, %v341_v53  ;;  %v1560_v31 = vpop.f32.mrb[19].mxu0  ;;  %v1577_v13 = vpop.f32.mrb[21].mxu1  ;;  %v534_v34 = vadd.f32 %v518_v16, %v437_v26 }
 0x112   : > { %v529_v35 = vpop.f32.mrb[22].mxu1 }
 0x113   : > { %v1578_v38 = vpop.f32.mrb[23].mxu1  ;;  %v535_v39 = vadd.f32 %v521_v23, %v438_v30 }
 0x116   : > { %v429_v42 = vpop.f32.mrb[20].mxu0 }
 0x117   : > { %v439_v44 = vadd.f32 %v429_v42, %v346_v3  ;;  %v1563_v0 = vpop.f32.mrb[21].mxu0 }
 0x118   : > { %v432_v6 = vpop.f32.mrb[22].mxu0  ;;  %v696_v1 = vpop.f32.mrb[24].mxu1 }
 0x119   : > { %v1564_v41 = vpop.f32.mrb[23].mxu0  ;;  %v1597_v62 = vpop.f32.mrb[25].mxu1  ;;  %v536_v54 = vadd.f32 %v526_v29, %v439_v44 }
 0x11a   : > { %v699_v63 = vpop.f32.mrb[26].mxu1 }
 0x11b   : > { %v1598_v4 = vpop.f32.mrb[27].mxu1 }
 0x11e   : > { %v599_v8 = vpop.f32.mrb[24].mxu0 }
 0x11f   : > { %v621_v24 = vadd.f32 %v599_v8, %v532_v17  ;;  %v1583_v40 = vpop.f32.mrb[25].mxu0 }
 0x120   : > { %v602_v45 = vpop.f32.mrb[26].mxu0  ;;  %v704_v37 = vpop.f32.mrb[28].mxu1 }
 0x121   : > { %v622_v46 = vadd.f32 %v602_v45, %v533_v25  ;;  %v1584_v47 = vpop.f32.mrb[27].mxu0  ;;  %v1601_v48 = vpop.f32.mrb[29].mxu1  ;;  %v718_v49 = vadd.f32 %v696_v1, %v621_v24 }
 0x122   : > { %v707_v2 = vpop.f32.mrb[30].mxu1 }
 0x123   : > { %v1602_v50 = vpop.f32.mrb[31].mxu1  ;;  %v719_v52 = vadd.f32 %v699_v63, %v622_v46 }
 0x126   : > { %v607_v51 = vpop.f32.mrb[28].mxu0 }
 0x127   : > { %v623_v55 = vadd.f32 %v607_v51, %v534_v34  ;;  %v1587_v22 = vpop.f32.mrb[29].mxu0 }
 0x128   : > { %v610_v56 = vpop.f32.mrb[30].mxu0  ;;  %v712_v53 = vpop.f32.mrb[32].mxu1 }
 0x129   : > { %v624_v33 = vadd.f32 %v610_v56, %v535_v39  ;;  %v1588_v57 = vpop.f32.mrb[31].mxu0  ;;  %v1605_v58 = vpop.f32.mrb[33].mxu1  ;;  %v720_v60 = vadd.f32 %v704_v37, %v623_v55 }
 0x12a   : > { %v715_v61 = vpop.f32.mrb[34].mxu1 }
 0x12b   : > { %v1606_v3 = vpop.f32.mrb[35].mxu1  ;;  %v721_v18 = vadd.f32 %v707_v2, %v624_v33 }
 0x12e   : > { %v615_v36 = vpop.f32.mrb[32].mxu0 }
 0x12f   : > { %v625_v9 = vadd.f32 %v615_v36, %v536_v54  ;;  %v1591_v7 = vpop.f32.mrb[33].mxu0 }
 0x130   : > { %v618_v59 = vpop.f32.mrb[34].mxu0  ;;  %v882_v10 = vpop.f32.mrb[36].mxu1 }
 0x131   : > { %v1592_v11 = vpop.f32.mrb[35].mxu0  ;;  %v1625_v12 = vpop.f32.mrb[37].mxu1  ;;  %v722_v14 = vadd.f32 %v712_v53, %v625_v9 }
 0x132   : > { %v885_v15 = vpop.f32.mrb[38].mxu1 }
 0x133   : > { %v1626_v32 = vpop.f32.mrb[39].mxu1 }
 0x136   : > { %v785_v16 = vpop.f32.mrb[36].mxu0 }
 0x137   : > { %v807_v43 = vadd.f32 %v785_v16, %v718_v49  ;;  %v1611_v19 = vpop.f32.mrb[37].mxu0 }
 0x138   : > { %v788_v20 = vpop.f32.mrb[38].mxu0  ;;  %v890_v17 = vpop.f32.mrb[40].mxu1 }
 0x139   : > { %v808_v23 = vadd.f32 %v788_v20, %v719_v52  ;;  %v1612_v21 = vpop.f32.mrb[39].mxu0  ;;  %v1629_v25 = vpop.f32.mrb[41].mxu1  ;;  %v904_v5 = vadd.f32 %v882_v10, %v807_v43 }
 0x13a   : > { %v893_v26 = vpop.f32.mrb[42].mxu1  ;;  %v1451_v25 = vld [vmem:[%s2120_s2] ss:$0 sm:$0xff] }
 0x13b   : > { %v1630_v27 = vpop.f32.mrb[43].mxu1  ;;  %v905_v28 = vadd.f32 %v885_v15, %v808_v23 }
 0x13e   : > { %v793_v29 = vpop.f32.mrb[40].mxu0 }
 0x13f   : > { %v809_v30 = vadd.f32 %v793_v29, %v720_v60  ;;  %v1615_v31 = vpop.f32.mrb[41].mxu0 }
 0x140   : > { %v796_v13 = vpop.f32.mrb[42].mxu0  ;;  %v898_v34 = vpop.f32.mrb[44].mxu1 }
 0x141   : > { %v810_v35 = vadd.f32 %v796_v13, %v721_v18  ;;  %v1616_v38 = vpop.f32.mrb[43].mxu0  ;;  %v1633_v39 = vpop.f32.mrb[45].mxu1  ;;  %v906_v42 = vadd.f32 %v890_v17, %v809_v30 }
 0x142   : > { %v901_v44 = vpop.f32.mrb[46].mxu1 }
 0x143   : > { %v1634_v0 = vpop.f32.mrb[47].mxu1  ;;  %v907_v6 = vadd.f32 %v893_v26, %v810_v35 }
 0x146   : > { %v801_v1 = vpop.f32.mrb[44].mxu0 }
 0x147   : > { %v811_v41 = vadd.f32 %v801_v1, %v722_v14  ;;  %v1619_v62 = vpop.f32.mrb[45].mxu0 }
 0x148   : > { %v804_v54 = vpop.f32.mrb[46].mxu0  ;;  %v1069_v63 = vpop.f32.mrb[48].mxu1 }
 0x149   : > { %v1620_v4 = vpop.f32.mrb[47].mxu0  ;;  %v1653_v8 = vpop.f32.mrb[49].mxu1  ;;  %v908_v24 = vadd.f32 %v898_v34, %v811_v41 }
 0x14a   : > { %v1072_v40 = vpop.f32.mrb[50].mxu1 }
 0x14b   : > { %v1654_v45 = vpop.f32.mrb[51].mxu1 }
 0x14e   : > { %v975_v37 = vpop.f32.mrb[48].mxu0 }
 0x14f   : > { %v997_v46 = vadd.f32 %v975_v37, %v904_v5  ;;  %v1639_v47 = vpop.f32.mrb[49].mxu0 }
 0x150   : > { %v978_v48 = vpop.f32.mrb[50].mxu0  ;;  %v1077_v49 = vpop.f32.mrb[52].mxu1 }
 0x151   : > { %v998_v2 = vadd.f32 %v978_v48, %v905_v28  ;;  %v1640_v50 = vpop.f32.mrb[51].mxu0  ;;  %v1657_v52 = vpop.f32.mrb[53].mxu1  ;;  %v1091_v51 = vadd.f32 %v1069_v63, %v997_v46 }
 0x152   : > { %v1080_v55 = vpop.f32.mrb[54].mxu1 }
 0x153   : > { %v1658_v22 = vpop.f32.mrb[55].mxu1  ;;  %v1092_v56 = vadd.f32 %v1072_v40, %v998_v2 }
 0x156   : > { %v983_v53 = vpop.f32.mrb[52].mxu0 }
 0x157   : > { %v999_v33 = vadd.f32 %v983_v53, %v906_v42  ;;  %v1643_v57 = vpop.f32.mrb[53].mxu0 }
 0x158   : > { %v986_v58 = vpop.f32.mrb[54].mxu0  ;;  %v1085_v60 = vpop.f32.mrb[56].mxu1 }
 0x159   : > { %v1000_v61 = vadd.f32 %v986_v58, %v907_v6  ;;  %v1644_v3 = vpop.f32.mrb[55].mxu0  ;;  %v1661_v18 = vpop.f32.mrb[57].mxu1  ;;  %v1093_v36 = vadd.f32 %v1077_v49, %v999_v33  ;;  %v1325_v33 = vld [vmem:[%s2109_s22 + $0x10] sm:$0x1] }
 0x15a   : > { %v1088_v9 = vpop.f32.mrb[58].mxu1 }
 0x15b   : > { %v1662_v7 = vpop.f32.mrb[59].mxu1  ;;  %v1094_v59 = vadd.f32 %v1080_v55, %v1000_v61 }
 0x15e   : > { %v991_v10 = vpop.f32.mrb[56].mxu0 }
 0x15f   : > { %v1001_v11 = vadd.f32 %v991_v10, %v908_v24  ;;  %v1647_v12 = vpop.f32.mrb[57].mxu0 }
 0x160   : > { %v994_v14 = vpop.f32.mrb[58].mxu0  ;;  %v1253_v15 = vpop.f32.mrb[60].mxu1 }
 0x161   : > { %v1648_v32 = vpop.f32.mrb[59].mxu0  ;;  %v1681_v16 = vpop.f32.mrb[61].mxu1  ;;  %v1095_v43 = vadd.f32 %v1085_v60, %v1001_v11 }
 0x162   : > { %v1256_v19 = vpop.f32.mrb[62].mxu1 }
 0x163   : > { %v1682_v20 = vpop.f32.mrb[63].mxu1 }
 0x166   : > { %v1157_v17 = vpop.f32.mrb[60].mxu0 }
 0x167   : > { %v1179_v23 = vadd.f32 %v1157_v17, %v1091_v51  ;;  %v1667_v21 = vpop.f32.mrb[61].mxu0 }
 0x168   : > { %v1160_v5 = vpop.f32.mrb[62].mxu0  ;;  %v1261_v26 = vpop.f32.mrb[64].mxu1 }
 0x169   : > { %v1275_v27 = vadd.f32 %v1253_v15, %v1179_v23  ;;  %v1180_v28 = vadd.f32 %v1160_v5, %v1092_v56  ;;  %v1668_v29 = vpop.f32.mrb[63].mxu0  ;;  %v1685_v30 = vpop.f32.mrb[65].mxu1 }
 0x16a   : > { %v1264_v31 = vpop.f32.mrb[66].mxu1 }
 0x16b   : > { %v1287_v13 = vadd.f32 %v1451_v25, %v1275_v27  ;;  %v1276_v34 = vadd.f32 %v1256_v19, %v1180_v28  ;;  %v1686_v35 = vpop.f32.mrb[67].mxu1 }
 0x16d   : > { %v1288_v38 = vadd.f32 %v1451_v25, %v1276_v34  ;;  %v1292_v42 = vmax.f32 %v1287_v13, 0.0 }
 0x16e   : > { %v1165_v39 = vpop.f32.mrb[64].mxu0 }
 0x16f   : > { %v1293_v44 = vmax.f32 %v1288_v38, 0.0  ;;  %v1181_v0 = vadd.f32 %v1165_v39, %v1093_v36  ;;  %v1671_v6 = vpop.f32.mrb[65].mxu0 }
 0x170   : > { %v1168_v1 = vpop.f32.mrb[66].mxu0  ;;  %v1269_v41 = vpop.f32.mrb[68].mxu1 }
 0x171   : > { %v1467_v62 = vpack.c.bf16 %v1293_v44, %v1292_v42  ;;  %v1277_v54 = vadd.f32 %v1261_v26, %v1181_v0  ;;  %v1182_v63 = vadd.f32 %v1168_v1, %v1094_v59  ;;  %v1672_v4 = vpop.f32.mrb[67].mxu0  ;;  %v1689_v8 = vpop.f32.mrb[69].mxu1 }
 0x172   : > { %v1272_v24 = vpop.f32.mrb[70].mxu1 }
 0x173   : > { %1468 = vst [vmem:[%s2109_s22] sm:$0xff] %v1467_v62   ;;  %v1289_v40 = vadd.f32 %v1451_v25, %v1277_v54  ;;  %v1278_v45 = vadd.f32 %v1264_v31, %v1182_v63  ;;  %v1690_v37 = vpop.f32.mrb[71].mxu1 }
 0x175   : > { %v1290_v46 = vadd.f32 %v1451_v25, %v1278_v45  ;;  %v1294_v48 = vmax.f32 %v1289_v40, 0.0 }
 0x176   : > { %v1173_v47 = vpop.f32.mrb[68].mxu0 }
 0x177   : > { %v1295_v49 = vmax.f32 %v1290_v46, 0.0  ;;  %v1183_v2 = vadd.f32 %v1173_v47, %v1095_v43  ;;  %v1675_v50 = vpop.f32.mrb[69].mxu0 }
 0x178   : > { %v1176_v52 = vpop.f32.mrb[70].mxu0 }
 0x179   : > { %v1472_v51 = vpack.c.bf16 %v1295_v49, %v1294_v48  ;;  %v1279_v55 = vadd.f32 %v1269_v41, %v1183_v2  ;;  %v1676_v22 = vpop.f32.mrb[71].mxu0 }
 0x17b   : > { %1474 = vst [vmem:[%s2109_s22 + $0x8] sm:$0xff] %v1472_v51   ;;  %v1291_v56 = vadd.f32 %v1451_v25, %v1279_v55 }
 0x17d   : > { %v1296_v53 = vmax.f32 %v1291_v56, 0.0 }
 0x17f   : > { %v1463_v57 = vpack.c.bf16 %v1296_v53, %v1296_v53 }
 0x181   : > { %v1326_v58 = vsel %vm1324_vm12, %v1463_v57, %v1325_v33 }
 0x182   : > { %1327 = vst [vmem:[%s2109_s22 + $0x10] sm:$0x1] %v1326_v58 }
 0x183 PF: > { %s13_s12 = sadd.s32 1, %s1723_s12  }
 0x184   : > { %p10_p4 = scmp.ge.s32.totalorder %s13_s12, 4  }
 0x186   :  { %12 = sbr.rel (!%p10_p4) target bundleno = 1 (0x1), region = 73 }

</bundles_post_ra>
